<compile_context>
chip_gen: v6e
topology: v6e:2x2x1
jax: 0.10.0
libtpu: 0.0.40
codegen_flags: <defaults>
</compile_context>

<pallas_src>
import functools

import jax
import jax.numpy as jnp
from jax.experimental import pallas as pl
from jax.experimental.pallas import tpu as pltpu


# ------------------------------ Pallas kernel -------------------------------

def _fsr_kernel(x_ref, mask_ref, wc_ref, bc_ref, wf_ref, bf_ref, o_ref, *, width):
    # x_ref:    (Cin, H*W)    activations (f32 or bf16), lane-dense spatial axis
    # mask_ref: (9, H*W)      f32 border masks, one row per 3x3 tap (row-major taps)
    # wc_ref:   (Cin, Cin)    f32 centre tap of conv_atten (only tap that sees the
    #                         zero-padded 1x1 pooled map)
    # bc_ref:   (Cin, 1)      f32
    # wf_ref:   (Cout, 9*Cin) conv weight, columns ordered (kh, kw, cin), x dtype
    # bf_ref:   (Cout, 1)     f32
    # o_ref:    (Cout, H*W)   x dtype
    cin, hw = x_ref.shape
    mm_dtype = x_ref.dtype

    xf = x_ref[...].astype(jnp.float32)

    # 1) Global average pool over the spatial lanes.
    pooled = jnp.sum(xf, axis=-1, keepdims=True) * (1.0 / hw)            # (Cin, 1)

    # 2) conv_atten on a zero-padded 1x1 input == matvec with the centre weights.
    logits = jnp.dot(wc_ref[...], pooled,
                     preferred_element_type=jnp.float32) + bc_ref[...]   # (Cin, 1)

    # 3) x + x*sigmoid(.) : per-channel, spatially constant scale.  Folding it onto
    #    x BEFORE im2col is exact (zero padding stays zero under the scale).
    xs = xf * (1.0 + jax.nn.sigmoid(logits))                             # (Cin, HW) f32

    # 4) In-kernel im2col: 8 lane rolls + border masks (f32 elementwise; v5e-safe).
    #    tap (kh, kw) at flat position p must read xs[p + kh*W + kw] (0 off-image).
    taps = []
    t = 0
    for kh in (-1, 0, 1):
        for kw in (-1, 0, 1):
            if kh == 0 and kw == 0:
                taps.append(xs.astype(mm_dtype))
            else:
                shift = (-(kh * width + kw)) % hw    # roll(x,s)[p] = x[p-s] => s=-delta
                rolled = pltpu.roll(xs, shift=shift, axis=1)
                taps.append((rolled * mask_ref[t:t + 1, :]).astype(mm_dtype))
            t += 1
    xcol = jnp.concatenate(taps, axis=0)                                 # (9*Cin, HW)

    # 5) 3x3 'same' conv + bias as one MXU matmul, f32 accumulation.
    acc = jnp.dot(wf_ref[...], xcol, preferred_element_type=jnp.float32)
    o_ref[...] = (acc + bf_ref[...]).astype(o_ref.dtype)


# -------------------------------- wrapper ------------------------------------

def feature_selection_reduction(params, x):
    """x: (B, Cin, H, W) NCHW (f32 or bf16) -> (B, Cout, H, W) in x.dtype."""
    B, Cin, H, W = x.shape
    Cout = params["conv_w"].shape[0]
    HW = H * W
    act_dtype = x.dtype

    xr = x.reshape(B, Cin, HW)

    # Border masks for the shifted taps (constant, 9*HW floats; built with plain XLA
    # so the kernel never needs vector integer div/mod).
    pos = jnp.arange(HW, dtype=jnp.int32)
    hh, ww = pos // W, pos % W
    rows = []
    for kh in (-1, 0, 1):
        for kw in (-1, 0, 1):
            valid = jnp.ones((HW,), jnp.bool_)
            if kh == -1:
                valid &= hh >= 1
            if kh == 1:
                valid &= hh <= H - 2
            if kw == -1:
                valid &= ww >= 1
            if kw == 1:
                valid &= ww <= W - 2
            rows.append(valid)
    mask = jnp.stack(rows, axis=0).astype(jnp.float32)                   # (9, HW)

    wc = params["conv_atten_w"][:, :, 1, 1].astype(jnp.float32)          # (Cin, Cin)
    bc = params["conv_atten_b"].astype(jnp.float32).reshape(Cin, 1)
    wf = jnp.transpose(params["conv_w"], (0, 2, 3, 1)).reshape(
        Cout, 9 * Cin).astype(act_dtype)                                 # (Cout, 9*Cin)
    bf = params["conv_b"].astype(jnp.float32).reshape(Cout, 1)

    itemsize = act_dtype.itemsize
    cost = pl.CostEstimate(
        flops=2 * B * Cout * 9 * Cin * HW + 2 * B * Cin * Cin,
        transcendentals=B * Cin,
        bytes_accessed=B * (Cin + Cout) * HW * itemsize
        + (Cin * Cin + Cout * 9 * Cin + 9 * HW + Cin + Cout) * 4,
    )

    out = pl.pallas_call(
        functools.partial(_fsr_kernel, width=W),
        out_shape=jax.ShapeDtypeStruct((B, Cout, HW), act_dtype),
        grid=(B,),
        in_specs=[
            pl.BlockSpec((None, Cin, HW), lambda b: (b, 0, 0)),
            pl.BlockSpec((9, HW), lambda b: (0, 0)),
            pl.BlockSpec((Cin, Cin), lambda b: (0, 0)),
            pl.BlockSpec((Cin, 1), lambda b: (0, 0)),
            pl.BlockSpec((Cout, 9 * Cin), lambda b: (0, 0)),
            pl.BlockSpec((Cout, 1), lambda b: (0, 0)),
        ],
        out_specs=pl.BlockSpec((None, Cout, HW), lambda b: (b, 0, 0)),
        compiler_params=pltpu.CompilerParams(dimension_semantics=("parallel",)),
        cost_estimate=cost,
    )(xr, mask, wc, bc, wf, bf)
    # TODO(synk): for large H*W (one image's Cin*HW block no longer fitting VMEM,
    # threshold ~2x lower on v7x's 64 MiB) add a spatial-tile grid axis and move the
    # pooled->sigmoid->scale stage into a cheap per-batch pre-stage folded into
    # per-image weights so the tiled conv has no cross-tile reduction; on single-TC
    # v5e/v6e with tiny batches the batch axis can also be folded into the lane dim
    # (masks then use (p//W)%H) to save the ~0.35us/step grid overhead.
    return out.reshape(B, Cout, H, W)


# --------------------------- pure-JAX reference -------------------------------

def _reference(params, x):
    Cin = x.shape[1]
    dn = ("NCHW", "OIHW", "NCHW")
    pooled = jnp.mean(x, axis=(2, 3), keepdims=True)
    att = jax.lax.conv_general_dilated(pooled, params["conv_atten_w"], (1, 1),
                                       ((1, 1), (1, 1)), dimension_numbers=dn)
    att = jax.nn.sigmoid(att + params["conv_atten_b"].reshape(1, Cin, 1, 1))
    x2 = x + x * att
    out = jax.lax.conv_general_dilated(x2, params["conv_w"], (1, 1),
                                       ((1, 1), (1, 1)), dimension_numbers=dn)
    return out + params["conv_b"].reshape(1, -1, 1, 1)


# --------------------------- deterministic params -----------------------------

def init_params(key, in_chan, out_chan):
    ks = jax.random.split(key, 4)

    def w(k, shape, scale=0.05):
        return (scale * jax.random.normal(k, shape)).astype(jnp.float32)

    return dict(
        conv_atten_w=w(ks[0], (in_chan, in_chan, 3, 3)),
        conv_atten_b=w(ks[1], (in_chan,)),
        conv_w=w(ks[2], (out_chan, in_chan, 3, 3)),
        conv_b=w(ks[3], (out_chan,)),
    )


if __name__ == "__main__":
    key = jax.random.PRNGKey(0)
    k1, k2 = jax.random.split(key)
    B, Cin, Cout, H, W = 2, 32, 16, 16, 16
    x = jax.random.normal(k1, (B, Cin, H, W), jnp.float32)
    params = init_params(k2, Cin, Cout)

    fwd = jax.jit(feature_selection_reduction)
    ref = _reference(params, x)

    # f32 activation path.  Tolerance tightened vs. the previous 5e-2; it is kept at
    # 2e-2 (not 1e-5) only to stay safe if the MXU runs default-precision f32 matmuls
    # as bf16 passes on some generations — layout / tap-ordering bugs give O(1)
    # errors and are still caught.
    out = fwd(params, x)
    jax.block_until_ready(out)
    assert out.shape == (B, Cout, H, W) and out.dtype == jnp.float32
    err = float(jnp.max(jnp.abs(out - ref)))
    assert err < 2e-2, f"f32 max abs err {err}"

    # bf16 activation path (halves HBM bytes of the dominant operand on this
    # memory-bound op); bf16 rounding of inputs/weights/output bounds the error.
    out_bf = fwd(params, x.astype(jnp.bfloat16))
    jax.block_until_ready(out_bf)
    assert out_bf.shape == (B, Cout, H, W) and out_bf.dtype == jnp.bfloat16
    err_bf = float(jnp.max(jnp.abs(out_bf.astype(jnp.float32) - ref)))
    assert err_bf < 6e-2, f"bf16 max abs err {err_bf}"

    print("KERNEL_OK")
</pallas_src>

<mosaic_0001>
module attributes {stable_mosaic.version = 11 : i64} {
  func.func @_fsr_kernel(%arg0: i32, %arg1: memref<1x32x256xf32, #tpu.memory_space<vmem>>, %arg2: memref<9x256xf32, #tpu.memory_space<vmem>>, %arg3: memref<32x32xf32, #tpu.memory_space<vmem>>, %arg4: memref<32x1xf32, #tpu.memory_space<vmem>>, %arg5: memref<16x288xf32, #tpu.memory_space<vmem>>, %arg6: memref<16x1xf32, #tpu.memory_space<vmem>>, %arg7: memref<1x16x256xf32, #tpu.memory_space<vmem>>) attributes {dimension_semantics = [#tpu.dimension_semantics<parallel>], iteration_bounds = array<i64: 2>, scalar_prefetch = 0 : i64, scratch_operands = 0 : i64, tpu.core_type = #tpu.core_type<tc>, window_params = [{transform_indices = @transform_0, window_bounds = array<i64: 1, 32, 256>}, {pipeline_mode = #tpu.pipeline_mode<synchronous>, transform_indices = @transform_1, window_bounds = array<i64: 9, 256>}, {pipeline_mode = #tpu.pipeline_mode<synchronous>, transform_indices = @transform_2, window_bounds = array<i64: 32, 32>}, {pipeline_mode = #tpu.pipeline_mode<synchronous>, transform_indices = @transform_3, window_bounds = array<i64: 32, 1>}, {pipeline_mode = #tpu.pipeline_mode<synchronous>, transform_indices = @transform_4, window_bounds = array<i64: 16, 288>}, {pipeline_mode = #tpu.pipeline_mode<synchronous>, transform_indices = @transform_5, window_bounds = array<i64: 16, 1>}, {transform_indices = @transform_6, window_bounds = array<i64: 1, 16, 256>}]} {
    %c0 = arith.constant 0 : index
    %c0_0 = arith.constant 0 : index
    %c0_1 = arith.constant 0 : index
    %0 = vector.load %arg1[%c0, %c0_0, %c0_1] : memref<1x32x256xf32, #tpu.memory_space<vmem>>, vector<1x32x256xf32>
    %1 = vector.shape_cast %0 : vector<1x32x256xf32> to vector<32x256xf32>
    %cst = arith.constant dense<0.000000e+00> : vector<32xf32>
    %2 = vector.multi_reduction <add>, %1, %cst [1] : vector<32x256xf32> to vector<32xf32>
    %3 = vector.shape_cast %2 : vector<32xf32> to vector<32x1xf32>
    %cst_2 = arith.constant 3.906250e-03 : f32
    %4 = vector.broadcast %cst_2 : f32 to vector<32x1xf32>
    %5 = arith.mulf %3, %4 : vector<32x1xf32>
    %c0_3 = arith.constant 0 : index
    %c0_4 = arith.constant 0 : index
    %6 = vector.load %arg3[%c0_3, %c0_4] : memref<32x32xf32, #tpu.memory_space<vmem>>, vector<32x32xf32>
    %cst_5 = arith.constant dense<0.000000e+00> : vector<32x1xf32>
    %7 = tpu.matmul %6, %5, %cst_5 {dimension_numbers = #tpu.dot_dimension_numbers<[1], [0], [0], [1], [0, 0, 1, 1], [], []>} : vector<32x32xf32>, vector<32x1xf32>, vector<32x1xf32> -> vector<32x1xf32>
    %c0_6 = arith.constant 0 : index
    %c0_7 = arith.constant 0 : index
    %8 = vector.load %arg4[%c0_6, %c0_7] : memref<32x1xf32, #tpu.memory_space<vmem>>, vector<32x1xf32>
    %9 = arith.addf %7, %8 : vector<32x1xf32>
    %10 = arith.negf %9 : vector<32x1xf32>
    %11 = math.exp %10 : vector<32x1xf32>
    %cst_8 = arith.constant 1.000000e+00 : f32
    %12 = vector.broadcast %cst_8 : f32 to vector<32x1xf32>
    %13 = arith.addf %12, %11 : vector<32x1xf32>
    %14 = arith.divf %12, %13 : vector<32x1xf32>
    %cst_9 = arith.constant 1.000000e+00 : f32
    %15 = vector.broadcast %cst_9 : f32 to vector<32x1xf32>
    %16 = arith.addf %15, %14 : vector<32x1xf32>
    %17 = vector.broadcast %16 : vector<32x1xf32> to vector<32x256xf32>
    %18 = arith.mulf %1, %17 : vector<32x256xf32>
    %c17_i32 = arith.constant 17 : i32
    %19 = tpu.dynamic_rotate %18 by %c17_i32 dim 1 : vector<32x256xf32>, i32 -> vector<32x256xf32>
    %c0_10 = arith.constant 0 : index
    %c0_11 = arith.constant 0 : index
    %20 = vector.load %arg2[%c0_10, %c0_11] : memref<9x256xf32, #tpu.memory_space<vmem>>, vector<1x256xf32>
    %21 = vector.broadcast %20 : vector<1x256xf32> to vector<32x256xf32>
    %22 = arith.mulf %19, %21 : vector<32x256xf32>
    %c16_i32 = arith.constant 16 : i32
    %23 = tpu.dynamic_rotate %18 by %c16_i32 dim 1 : vector<32x256xf32>, i32 -> vector<32x256xf32>
    %c1 = arith.constant 1 : index
    %c0_12 = arith.constant 0 : index
    %24 = vector.load %arg2[%c1, %c0_12] : memref<9x256xf32, #tpu.memory_space<vmem>>, vector<1x256xf32>
    %25 = vector.broadcast %24 : vector<1x256xf32> to vector<32x256xf32>
    %26 = arith.mulf %23, %25 : vector<32x256xf32>
    %c15_i32 = arith.constant 15 : i32
    %27 = tpu.dynamic_rotate %18 by %c15_i32 dim 1 : vector<32x256xf32>, i32 -> vector<32x256xf32>
    %c2 = arith.constant 2 : index
    %c0_13 = arith.constant 0 : index
    %28 = vector.load %arg2[%c2, %c0_13] : memref<9x256xf32, #tpu.memory_space<vmem>>, vector<1x256xf32>
    %29 = vector.broadcast %28 : vector<1x256xf32> to vector<32x256xf32>
    %30 = arith.mulf %27, %29 : vector<32x256xf32>
    %c1_i32 = arith.constant 1 : i32
    %31 = tpu.dynamic_rotate %18 by %c1_i32 dim 1 : vector<32x256xf32>, i32 -> vector<32x256xf32>
    %c3 = arith.constant 3 : index
    %c0_14 = arith.constant 0 : index
    %32 = vector.load %arg2[%c3, %c0_14] : memref<9x256xf32, #tpu.memory_space<vmem>>, vector<1x256xf32>
    %33 = vector.broadcast %32 : vector<1x256xf32> to vector<32x256xf32>
    %34 = arith.mulf %31, %33 : vector<32x256xf32>
    %c255_i32 = arith.constant 255 : i32
    %35 = tpu.dynamic_rotate %18 by %c255_i32 dim 1 : vector<32x256xf32>, i32 -> vector<32x256xf32>
    %c5 = arith.constant 5 : index
    %c0_15 = arith.constant 0 : index
    %36 = vector.load %arg2[%c5, %c0_15] : memref<9x256xf32, #tpu.memory_space<vmem>>, vector<1x256xf32>
    %37 = vector.broadcast %36 : vector<1x256xf32> to vector<32x256xf32>
    %38 = arith.mulf %35, %37 : vector<32x256xf32>
    %c241_i32 = arith.constant 241 : i32
    %39 = tpu.dynamic_rotate %18 by %c241_i32 dim 1 : vector<32x256xf32>, i32 -> vector<32x256xf32>
    %c6 = arith.constant 6 : index
    %c0_16 = arith.constant 0 : index
    %40 = vector.load %arg2[%c6, %c0_16] : memref<9x256xf32, #tpu.memory_space<vmem>>, vector<1x256xf32>
    %41 = vector.broadcast %40 : vector<1x256xf32> to vector<32x256xf32>
    %42 = arith.mulf %39, %41 : vector<32x256xf32>
    %c240_i32 = arith.constant 240 : i32
    %43 = tpu.dynamic_rotate %18 by %c240_i32 dim 1 : vector<32x256xf32>, i32 -> vector<32x256xf32>
    %c7 = arith.constant 7 : index
    %c0_17 = arith.constant 0 : index
    %44 = vector.load %arg2[%c7, %c0_17] : memref<9x256xf32, #tpu.memory_space<vmem>>, vector<1x256xf32>
    %45 = vector.broadcast %44 : vector<1x256xf32> to vector<32x256xf32>
    %46 = arith.mulf %43, %45 : vector<32x256xf32>
    %c239_i32 = arith.constant 239 : i32
    %47 = tpu.dynamic_rotate %18 by %c239_i32 dim 1 : vector<32x256xf32>, i32 -> vector<32x256xf32>
    %c8 = arith.constant 8 : index
    %c0_18 = arith.constant 0 : index
    %48 = vector.load %arg2[%c8, %c0_18] : memref<9x256xf32, #tpu.memory_space<vmem>>, vector<1x256xf32>
    %49 = vector.broadcast %48 : vector<1x256xf32> to vector<32x256xf32>
    %50 = arith.mulf %47, %49 : vector<32x256xf32>
    %51 = tpu.concatenate %22, %26, %30, %34, %18, %38, %42, %46, %50 in 0 : vector<32x256xf32>, vector<32x256xf32>, vector<32x256xf32>, vector<32x256xf32>, vector<32x256xf32>, vector<32x256xf32>, vector<32x256xf32>, vector<32x256xf32>, vector<32x256xf32> -> vector<288x256xf32>
    %c0_19 = arith.constant 0 : index
    %c0_20 = arith.constant 0 : index
    %52 = vector.load %arg5[%c0_19, %c0_20] : memref<16x288xf32, #tpu.memory_space<vmem>>, vector<16x288xf32>
    %cst_21 = arith.constant dense<0.000000e+00> : vector<16x256xf32>
    %53 = tpu.matmul %52, %51, %cst_21 {dimension_numbers = #tpu.dot_dimension_numbers<[1], [0], [0], [1], [0, 0, 1, 1], [], []>} : vector<16x288xf32>, vector<288x256xf32>, vector<16x256xf32> -> vector<16x256xf32>
    %c0_22 = arith.constant 0 : index
    %c0_23 = arith.constant 0 : index
    %54 = vector.load %arg6[%c0_22, %c0_23] : memref<16x1xf32, #tpu.memory_space<vmem>>, vector<16x1xf32>
    %55 = vector.broadcast %54 : vector<16x1xf32> to vector<16x256xf32>
    %56 = arith.addf %53, %55 : vector<16x256xf32>
    %c0_24 = arith.constant 0 : index
    %c0_25 = arith.constant 0 : index
    %c0_26 = arith.constant 0 : index
    %57 = vector.load %arg7[%c0_24, %c0_25, %c0_26] : memref<1x16x256xf32, #tpu.memory_space<vmem>>, vector<1x16x256xf32>
    %58 = vector.shape_cast %57 : vector<1x16x256xf32> to vector<16x256xf32>
    %59 = vector.shape_cast %56 : vector<16x256xf32> to vector<1x16x256xf32>
    tpu.vector_store %arg7[%c0_24, %c0_25, %c0_26], %59 {strides = array<i32>} : memref<1x16x256xf32, #tpu.memory_space<vmem>>, vector<1x16x256xf32>,
    return
  }
  func.func @transform_0(%arg0: i32) -> (i32, i32, i32) {
    %c0_i32 = arith.constant 0 : i32
    %c0_i32_0 = arith.constant 0 : i32
    %c0_i32_1 = arith.constant 0 : i32
    return %arg0, %c0_i32, %c0_i32_0 : i32, i32, i32
  }
  func.func @transform_1(%arg0: i32) -> (i32, i32) {
    %c0_i32 = arith.constant 0 : i32
    %c0_i32_0 = arith.constant 0 : i32
    %c0_i32_1 = arith.constant 0 : i32
    return %c0_i32, %c0_i32_0 : i32, i32
  }
  func.func @transform_2(%arg0: i32) -> (i32, i32) {
    %c0_i32 = arith.constant 0 : i32
    %c0_i32_0 = arith.constant 0 : i32
    %c0_i32_1 = arith.constant 0 : i32
    return %c0_i32, %c0_i32_0 : i32, i32
  }
  func.func @transform_3(%arg0: i32) -> (i32, i32) {
    %c0_i32 = arith.constant 0 : i32
    %c0_i32_0 = arith.constant 0 : i32
    %c0_i32_1 = arith.constant 0 : i32
    return %c0_i32, %c0_i32_0 : i32, i32
  }
  func.func @transform_4(%arg0: i32) -> (i32, i32) {
    %c0_i32 = arith.constant 0 : i32
    %c0_i32_0 = arith.constant 0 : i32
    %c0_i32_1 = arith.constant 0 : i32
    return %c0_i32, %c0_i32_0 : i32, i32
  }
  func.func @transform_5(%arg0: i32) -> (i32, i32) {
    %c0_i32 = arith.constant 0 : i32
    %c0_i32_0 = arith.constant 0 : i32
    %c0_i32_1 = arith.constant 0 : i32
    return %c0_i32, %c0_i32_0 : i32, i32
  }
  func.func @transform_6(%arg0: i32) -> (i32, i32, i32) {
    %c0_i32 = arith.constant 0 : i32
    %c0_i32_0 = arith.constant 0 : i32
    %c0_i32_1 = arith.constant 0 : i32
    return %arg0, %c0_i32, %c0_i32_0 : i32, i32, i32
  }
}

</mosaic_0001>

<bundles_post_ra>
// kernel: feature_selection_reduction.1
= control target key start
LH: loop header
LB: loop body
LE: loop exit
PB: predicated region body
PF: predicated region fallthrough
CT: control target
= control target key end

     0   :  { %s1185_s21 = smov 0   ;;  %s1760_s0 = inlined_call_operand.vmem [shape: f32[2,32,256], index: 0, kind: input, shape index: {}]   ;;  %s1761_s1 = inlined_call_operand.vmem [shape: f32[9,256], index: 1, kind: input, shape index: {}]   ;;  %s1762_s2 = inlined_call_operand.vmem [shape: f32[32,32], index: 2, kind: input, shape index: {}]   ;;  %s1763_s3 = inlined_call_operand.vmem [shape: f32[32,1], index: 3, kind: input, shape index: {}]   ;;  %s1764_s4 = inlined_call_operand.vmem [shape: f32[16,288], index: 4, kind: input, shape index: {}]   ;;  %s1765_s5 = inlined_call_operand.vmem [shape: f32[16,1], index: 5, kind: input, shape index: {}]   ;;  %s1766_s6 = inlined_call_operand.vmem [shape: f32[2,16,256], index: 6, kind: output, shape index: {}]  }
   0x1 LB: > { %s1044_s22 = sadd.s32 4294967295, %s1138_s21   ;;  %p1048_p0 = scmp.ge.s32.totalorder %s1138_s21, 1  ;;  %s1138_s21 = sphi %s1185_s21, %s16_s21  }
   0x2   : > { %p212_p1 = scmp.lt.s32.totalorder %s1138_s21, 3 }
   0x4   : > { %p213_p2 = pnand %p1048_p0, %p212_p1 }
   0x5   : > { %p242_p3 = scmp.lt.s32.totalorder (!%p213_p2), %s1044_s22, 1  ;;  %s1141_s19 = smov (!%p213_p2), 1  }
   0x6   : > { %216 = sbr.rel (%p213_p2) target bundleno = 976 (0x3d0), region = 44  ;;  %s1142_s20 = smov (!%p213_p2), 15  }
   0x7   : > { %s1144_s24 = smov (!%p213_p2), 17   ;;  %s1145_s25 = smov (!%p213_p2), 112  }
   0x8   : > { %s1147_s27 = smov (!%p213_p2), 127   ;;  %s1148_s28 = smov (!%p213_p2), 111  }
   0xb   : > { %s1768_s22 = smov (!%p242_p3, %s1044_s22), 1  ;;  %v276_v12 = vld [vmem:[%s1762_s2] sm:$0xff]  ;;  %vm284_vm0 = vcmask 261120   ;;  %v277_v21 = vld [vmem:[%s1762_s2 + $0x8] sm:$0xff]  ;;  %v278_v22 = vld [vmem:[%s1762_s2 + $0x10] sm:$0xff]  ;;  %v1140_v24 = vmov 0  }
   0xc   : > { %s1072_s23 = sshll.u32 %s1768_s22, 6  ;;  %1090 = vmatprep.mubr.msk.f32.mxu0 %vm284_vm0, %v276_v12  ;;  %v279_v23 = vld [vmem:[%s1762_s2 + $0x18] sm:$0xff]  ;;  %1115 = vset.pattern.permute.xlu1 %v1140_v24  ;;  %v281_v25 = vld [vmem:[%s1763_s3 + $0x8] sm:$0xff]  ;;  %v280_v27 = vld [vmem:[%s1763_s3] sm:$0xff]  ;;  %s1073_s15 = sshll.u32 %s1768_s22, 5 }
   0xd   : > { %s246_s26 = scalar_lea.vmem %s1760_s0, %s1072_s23  ;;  %1114 = vset.pattern.permute.xlu0 %v1140_v24  ;;  %v283_v30 = vld [vmem:[%s1763_s3 + $0x18] sm:$0xff]  ;;  %v282_v34 = vld [vmem:[%s1763_s3 + $0x10] sm:$0xff]  ;;  %s1143_s23 = smov 16   ;;  %v813_v24 = vld [vmem:[%s1765_s5] sm:$0xff] }
   0xe   : > { %v1199_v0 = vld [vmem:[%s246_s26 + $0x30] sm:$0xff]  ;;  %v1201_v1 = vld [vmem:[%s246_s26 + $0x38] sm:$0xff]  ;;  %v1203_v2 = vld [vmem:[%s246_s26 + $0x20] sm:$0xff]  ;;  %s251_s18 = scalar_lea.vmem %s1766_s6, %s1073_s15 }
   0xf   : > { %v269_v3 = vadd.f32 %v1201_v1, %v1199_v0  ;;  %v1207_v4 = vld [vmem:[%s246_s26 + $0x28] sm:$0xff]  ;;  %v1209_v5 = vld [vmem:[%s246_s26 + $0x10] sm:$0xff]  ;;  %v1211_v6 = vld [vmem:[%s246_s26 + $0x18] sm:$0xff] }
  0x10   : > { %v263_v7 = vadd.f32 %v1211_v6, %v1209_v5  ;;  %v1215_v8 = vld [vmem:[%s246_s26] sm:$0xff]  ;;  %v1217_v9 = vld [vmem:[%s246_s26 + $0x8] sm:$0xff]  ;;  %v266_v10 = vadd.f32 %v1207_v4, %v1203_v2  ;;  %s1146_s26 = smov 113  }
  0x11   : > { %270 = vadd.xlane.f32.xlu0 %v269_v3  ;;  %v260_v11 = vadd.f32 %v1217_v9, %v1215_v8 }
  0x12   : > { %264 = vadd.xlane.f32.xlu1 %v263_v7  ;;  %v814_v7 = vld [vmem:[%s1765_s5 + $0x8] sm:$0xff] }
  0x15   : > { %267 = vadd.xlane.f32.xlu0 %v266_v10  ;;  %v808_v10 = vld [vmem:[%s1764_s4 + $0x8] sm:$0xff] }
  0x16   : > { %261 = vadd.xlane.f32.xlu1 %v260_v11  ;;  %895 = vmatprep.mubr.f32.mxu1 %v808_v10  ;;  %v454_v11 = vlaneseq }
  0x18   : > { %v1403_v12 = vand.u32 127, %v454_v11 }
  0x1a   : > { %vm456_vm1 = vcmp.lt.s32.totalorder %v1403_v12, 17  ;;  %vm731_vm2 = vcmp.lt.s32.totalorder %v1403_v12, 112  ;;  %vm593_vm3 = vcmp.lt.s32.totalorder %v1403_v12, 1  ;;  %vm547_vm4 = vcmp.lt.s32.totalorder %v1403_v12, 15 }
  0x1b   : > { %vm501_vm5 = vcmp.lt.s32.totalorder %v1403_v12, 16  ;;  %vm685_vm6 = vcmp.lt.s32.totalorder %v1403_v12, 113  ;;  %vm639_vm7 = vcmp.lt.s32.totalorder %v1403_v12, 127  ;;  %vm777_vm8 = vcmp.lt.s32.totalorder %v1403_v12, 111 }
  0x9a   : > { %v271_v13 = vpop.xlane.xlu0 %270 }
  0x9b   : > { %v275_v14 = vmul.f32 0.00390625, %v271_v13  ;;  %v265_v15 = vpop.xlane.xlu1 %264 }
  0x9c   : > { %v273_v19 = vmul.f32 0.00390625, %v265_v15  ;;  %v1149_v15 = vmov 0.0  }
  0x9d   : > { %1082 = vmatprep.subr.mxu0 %v275_v14 }
  0x9e   : > { %1083 = vmatpush3.msra.mxu0 %v275_v14  ;;  %v268_v16 = vpop.xlane.xlu0 %267 }
  0x9f   : > { %v274_v17 = vmul.f32 0.00390625, %v268_v16  ;;  %v262_v18 = vpop.xlane.xlu1 %261 }
  0xa0   : > { %v272_v20 = vmul.f32 0.00390625, %v262_v18 }
  0xa1   : > { %1084 = vmatprep.subr.mxu0 %v274_v17 }
  0xa2   : > { %1085 = vmatpush3.msra.mxu0 %v274_v17 }
  0xa3   : > { %1086 = vmatprep.subr.mxu0 %v273_v19 }
  0xa4   : > { %1087 = vmatpush3.msra.mxu0 %v273_v19 }
  0xa5   : > { %1088 = vmatprep.subr.mxu0 %v272_v20 }
  0xa6   : > { %1089 = vmatpush3.msra.mxu0 %v272_v20 }
  0xa7   : > { %1091 = vmatmul.mubr.msk.f32.vlgmr.msra.gmra.mxu0 %vm284_vm0, %v277_v21 }
  0xa8   : > { %1093 = vmatprep.mubr.msk.f32.mxu0 %vm284_vm0, %v278_v22 }
  0xab   : > { %1094 = vmatmul.mubr.msk.f32.gmra.mxu0 %vm284_vm0, %v279_v23 }
  0xac   : > { %972 = vmatprep.mubr.f32.mxu0 %v1149_v15 }
 0x167   : > { %v1092_v26 = vpop.f32.mrf.mxu0 }
 0x168   : > { %v369_v28 = vadd.f32 %v1092_v26, %v281_v25 }
 0x169   : > { %v363_v29 = vpop.f32.mrf.mxu0 }
 0x16a   : > { %v1058_v31 = vmul.f32 -1.442695, %v369_v28  ;;  %v364_v32 = vadd.f32 %v363_v29, %v280_v27 }
 0x16b   : > { %v1095_v33 = vpop.f32.mrf.mxu0 }
 0x16c   : > { %1116 = vpow2.f32 %v1058_v31  ;;  %v1057_v35 = vmul.f32 -1.442695, %v364_v32  ;;  %v379_v36 = vadd.f32 %v1095_v33, %v283_v30  ;;  %v468_v33 = vshrl.u32 %v454_v11, 7 }
 0x16d   : > { %v373_v37 = vpop.f32.mrf.mxu0 }
 0x16e   : > { %1118 = vpow2.f32 %v1057_v35  ;;  %v1060_v38 = vmul.f32 -1.442695, %v379_v36  ;;  %v374_v39 = vadd.f32 %v373_v37, %v282_v34  ;;  %v1453_v36 = vsub.s32 0, %v468_v33 }
 0x16f   : > { %v1455_v37 = vsub.s32 1, %v468_v33 }
 0x170   : > { %1120 = vpow2.f32 %v1060_v38  ;;  %v1059_v40 = vmul.f32 -1.442695, %v374_v39 }
 0x172   : > { %1122 = vpow2.f32 %v1059_v40  ;;  %v1063_v40 = vld [vmem:[%s1761_s1 + $0x3] ss:$8 sm:$0x3] }
 0x179   : > { %v1117_v41 = vpop.eup %1116 }
 0x17a   : > { %v395_v42 = vadd.f32 1.0, %v1117_v41  ;;  %v608_v41 = vrot.slane %v1063_v40, %v1453_v36 }
 0x17b   : > { %v1119_v43 = vpop.eup %1118 }
 0x17c   : > { %1124 = vrcp.f32 %v395_v42  ;;  %v394_v44 = vadd.f32 1.0, %v1119_v43  ;;  %v612_v42 = vrot.slane %v1063_v40, %v1455_v37 }
 0x17d   : > { %v1121_v45 = vpop.eup %1120 }
 0x17e   : > { %1126 = vrcp.f32 %v394_v44  ;;  %v397_v46 = vadd.f32 1.0, %v1121_v45 }
 0x17f   : > { %v1123_v47 = vpop.eup %1122 }
 0x180   : > { %1128 = vrcp.f32 %v397_v46  ;;  %v396_v48 = vadd.f32 1.0, %v1123_v47 }
 0x182   : > { %1130 = vrcp.f32 %v396_v48 }
 0x189   : > { %v1125_v49 = vpop.eup %1124 }
 0x18a   : > { %v407_v50 = vadd.f32 1.0, %v1125_v49 }
 0x18b   : > { %v1127_v51 = vpop.eup %1126 }
 0x18c   : > { %417 = vperm.xlu1 %1115, %v407_v50   ;;  %v406_v53 = vadd.f32 1.0, %v1127_v51 }
 0x18d   : > { %v1129_v52 = vpop.eup %1128 }
 0x18e   : > { %v409_v54 = vadd.f32 1.0, %v1129_v52 }
 0x18f   : > { %v1131_v55 = vpop.eup %1130 }
 0x190   : > { %412 = vperm.xlu1 %1115, %v406_v53   ;;  %v408_v56 = vadd.f32 1.0, %v1131_v55  ;;  %427 = vperm.xlu0 %1114, %v409_v54  }
 0x194   : > { %422 = vperm.xlu1 %1115, %v408_v56  }
 0x207   : > { %v418_v57 = vpop.permute.xlu1 %417 }
 0x208   : > { %v1252_v58 = vmul.f32 %v418_v57, %v1209_v5  ;;  %v1255_v59 = vmul.f32 %v418_v57, %v1211_v6 }
 0x20a   : > { %587 = vrot.lane.b32.xlu0 %v1255_v59, %s1141_s19  ;;  %579 = vrot.lane.b32.xlu1 %v1252_v58, %s1141_s19 }
 0x20b   : > { %v413_v60 = vpop.permute.xlu1 %412  ;;  %v428_v63 = vpop.permute.xlu0 %427 }
 0x20c   : > { %v1278_v61 = vmul.f32 %v413_v60, %v1215_v8  ;;  %v1281_v62 = vmul.f32 %v413_v60, %v1217_v9  ;;  %v1304_v3 = vmul.f32 %v428_v63, %v1199_v0  ;;  %v1307_v5 = vmul.f32 %v428_v63, %v1201_v1 }
 0x20e   : > { %541 = vrot.lane.b32.xlu0 %v1255_v59, %s1142_s20  ;;  %533 = vrot.lane.b32.xlu1 %v1252_v58, %s1142_s20 }
 0x20f   : > { %v423_v0 = vpop.permute.xlu1 %422 }
 0x210   : > { %v1330_v1 = vmul.f32 %v423_v0, %v1207_v4  ;;  %v1337_v6 = vmul.f32 %v423_v0, %v1203_v2 }
 0x212   : > { %495 = vrot.lane.b32.xlu0 %v1255_v59, %s1143_s23  ;;  %487 = vrot.lane.b32.xlu1 %v1252_v58, %s1143_s23 }
 0x216   : > { %448 = vrot.lane.b32.xlu0 %v1255_v59, %s1144_s24  ;;  %440 = vrot.lane.b32.xlu1 %v1252_v58, %s1144_s24 }
 0x21a   : > { %725 = vrot.lane.b32.xlu0 %v1255_v59, %s1145_s25  ;;  %717 = vrot.lane.b32.xlu1 %v1252_v58, %s1145_s25 }
 0x21e   : > { %585 = vrot.lane.b32.xlu0 %v1281_v62, %s1141_s19  ;;  %577 = vrot.lane.b32.xlu1 %v1278_v61, %s1141_s19 }
 0x222   : > { %539 = vrot.lane.b32.xlu0 %v1281_v62, %s1142_s20  ;;  %531 = vrot.lane.b32.xlu1 %v1278_v61, %s1142_s20 }
 0x226   : > { %493 = vrot.lane.b32.xlu0 %v1281_v62, %s1143_s23  ;;  %485 = vrot.lane.b32.xlu1 %v1278_v61, %s1143_s23 }
 0x22a   : > { %446 = vrot.lane.b32.xlu0 %v1281_v62, %s1144_s24  ;;  %438 = vrot.lane.b32.xlu1 %v1278_v61, %s1144_s24 }
 0x22e   : > { %723 = vrot.lane.b32.xlu0 %v1281_v62, %s1145_s25  ;;  %715 = vrot.lane.b32.xlu1 %v1278_v61, %s1145_s25 }
 0x232   : > { %545 = vrot.lane.b32.xlu0 %v1307_v5, %s1142_s20  ;;  %583 = vrot.lane.b32.xlu1 %v1304_v3, %s1141_s19 }
 0x236   : > { %499 = vrot.lane.b32.xlu0 %v1307_v5, %s1143_s23  ;;  %591 = vrot.lane.b32.xlu1 %v1307_v5, %s1141_s19 }
 0x23a   : > { %452 = vrot.lane.b32.xlu0 %v1307_v5, %s1144_s24  ;;  %537 = vrot.lane.b32.xlu1 %v1304_v3, %s1142_s20 }
 0x23e   : > { %729 = vrot.lane.b32.xlu0 %v1307_v5, %s1145_s25  ;;  %491 = vrot.lane.b32.xlu1 %v1304_v3, %s1143_s23 }
 0x242   : > { %683 = vrot.lane.b32.xlu0 %v1307_v5, %s1146_s26  ;;  %444 = vrot.lane.b32.xlu1 %v1304_v3, %s1144_s24 }
 0x246   : > { %721 = vrot.lane.b32.xlu1 %v1304_v3, %s1145_s25  ;;  %543 = vrot.lane.b32.xlu0 %v1330_v1, %s1142_s20 }
 0x24a   : > { %679 = vrot.lane.b32.xlu0 %v1255_v59, %s1146_s26  ;;  %581 = vrot.lane.b32.xlu1 %v1337_v6, %s1141_s19 }
 0x24e   : > { %497 = vrot.lane.b32.xlu0 %v1330_v1, %s1143_s23  ;;  %589 = vrot.lane.b32.xlu1 %v1330_v1, %s1141_s19 }
 0x252   : > { %677 = vrot.lane.b32.xlu0 %v1281_v62, %s1146_s26  ;;  %675 = vrot.lane.b32.xlu1 %v1304_v3, %s1146_s26 }
 0x256   : > { %450 = vrot.lane.b32.xlu0 %v1330_v1, %s1144_s24  ;;  %535 = vrot.lane.b32.xlu1 %v1337_v6, %s1142_s20 }
 0x25a   : > { %637 = vrot.lane.b32.xlu0 %v1307_v5, %s1147_s27  ;;  %671 = vrot.lane.b32.xlu1 %v1252_v58, %s1146_s26 }
 0x25e   : > { %727 = vrot.lane.b32.xlu0 %v1330_v1, %s1145_s25  ;;  %489 = vrot.lane.b32.xlu1 %v1337_v6, %s1143_s23 }
 0x262   : > { %633 = vrot.lane.b32.xlu0 %v1255_v59, %s1147_s27  ;;  %669 = vrot.lane.b32.xlu1 %v1278_v61, %s1146_s26 }
 0x266   : > { %681 = vrot.lane.b32.xlu0 %v1330_v1, %s1146_s26  ;;  %442 = vrot.lane.b32.xlu1 %v1337_v6, %s1144_s24 }
 0x26a   : > { %631 = vrot.lane.b32.xlu0 %v1281_v62, %s1147_s27  ;;  %629 = vrot.lane.b32.xlu1 %v1304_v3, %s1147_s27 }
 0x26e   : > { %635 = vrot.lane.b32.xlu0 %v1330_v1, %s1147_s27  ;;  %719 = vrot.lane.b32.xlu1 %v1337_v6, %s1145_s25 }
 0x272   : > { %775 = vrot.lane.b32.xlu0 %v1307_v5, %s1148_s28  ;;  %625 = vrot.lane.b32.xlu1 %v1252_v58, %s1147_s27 }
 0x276   : > { %771 = vrot.lane.b32.xlu0 %v1255_v59, %s1148_s28  ;;  %673 = vrot.lane.b32.xlu1 %v1337_v6, %s1146_s26 }
 0x27a   : > { %773 = vrot.lane.b32.xlu0 %v1330_v1, %s1148_s28  ;;  %623 = vrot.lane.b32.xlu1 %v1278_v61, %s1147_s27 }
 0x27c   : > { %v1384_v2 = vpop.permute.xlu0 %587  ;;  %v1386_v4 = vpop.permute.xlu1 %579 }
 0x27e   : > { %769 = vrot.lane.b32.xlu0 %v1281_v62, %s1148_s28  ;;  %627 = vrot.lane.b32.xlu1 %v1337_v6, %s1147_s27 }
 0x280   : > { %v1394_v8 = vpop.permute.xlu0 %541  ;;  %v1396_v9 = vpop.permute.xlu1 %533 }
 0x282   : > { %822 = vperm.xlu0 %1114, %v814_v7   ;;  %767 = vrot.lane.b32.xlu1 %v1304_v3, %s1148_s28  ;;  %v595_v7 = vsel %vm593_vm3, %v1386_v4, %v1384_v2 }
 0x283   : > { %v618_v33 = vmul.f32 %v612_v42, %v595_v7  ;;  %v549_v7 = vsel %vm547_vm4, %v1396_v9, %v1394_v8 }
 0x284   : > { %v1405_v13 = vpop.permute.xlu0 %495  ;;  %v1407_v14 = vpop.permute.xlu1 %487 }
 0x286   : > { %763 = vrot.lane.b32.xlu1 %v1252_v58, %s1148_s28 }
 0x288   : > { %v449_v16 = vpop.permute.xlu0 %448  ;;  %v441_v17 = vpop.permute.xlu1 %440 }
 0x289   : > { %v1415_v18 = vsel %vm456_vm1, %v441_v17, %v449_v16  ;;  %v1419_v19 = vsel %vm456_vm1, %v449_v16, %v441_v17  ;;  %v599_v16 = vsel %vm593_vm3, %v1384_v2, %v1386_v4 }
 0x28a   : > { %765 = vrot.lane.b32.xlu1 %v1337_v6, %s1148_s28  ;;  %v617_v2 = vmul.f32 %v608_v41, %v599_v16  ;;  %v1061_v16 = vld [vmem:[%s1761_s1 + $0x1] ss:$8 sm:$0x3] }
 0x28c   : > { %v726_v20 = vpop.permute.xlu0 %725  ;;  %v718_v21 = vpop.permute.xlu1 %717 }
 0x28d   : > { %v1426_v22 = vsel %vm731_vm2, %v718_v21, %v726_v20  ;;  %v1430_v23 = vsel %vm731_vm2, %v726_v20, %v718_v21  ;;  %v1062_v21 = vld [vmem:[%s1761_s1 + $0x2] ss:$8 sm:$0x3] }
 0x28e   : > { %761 = vrot.lane.b32.xlu1 %v1278_v61, %s1148_s28 }
 0x290   : > { %v586_v25 = vpop.permute.xlu0 %585  ;;  %v578_v26 = vpop.permute.xlu1 %577 }
 0x292   : > { %817 = vperm.xlu1 %1115, %v813_v24   ;;  %v594_v24 = vsel %vm593_vm3, %v578_v26, %v586_v25 }
 0x294   : > { %v1437_v27 = vpop.permute.xlu0 %539  ;;  %v1439_v28 = vpop.permute.xlu1 %531 }
 0x298   : > { %v1441_v29 = vpop.permute.xlu0 %493  ;;  %v1443_v30 = vpop.permute.xlu1 %485 }
 0x29c   : > { %v1445_v31 = vpop.permute.xlu0 %446  ;;  %v1447_v32 = vpop.permute.xlu1 %438 }
 0x2a0   : > { %v1449_v34 = vpop.permute.xlu0 %723  ;;  %v1451_v35 = vpop.permute.xlu1 %715 }
 0x2a4   : > { %v546_v38 = vpop.permute.xlu0 %545  ;;  %v584_v39 = vpop.permute.xlu1 %583 }
 0x2a8   : > { %v1463_v43 = vpop.permute.xlu0 %499  ;;  %v592_v44 = vpop.permute.xlu1 %591 }
 0x2a9   : > { %v601_v45 = vsel %vm593_vm3, %v592_v44, %v584_v39  ;;  %v597_v46 = vsel %vm593_vm3, %v584_v39, %v592_v44  ;;  %v598_v39 = vsel %vm593_vm3, %v586_v25, %v578_v26 }
 0x2aa   : > { %v622_v47 = vmul.f32 %v612_v42, %v597_v46  ;;  %v621_v48 = vmul.f32 %v608_v41, %v601_v45  ;;  %v566_v45 = vrot.slane %v1062_v21, %v1455_v37  ;;  %v616_v46 = vmul.f32 %v612_v42, %v594_v24 }
 0x2ab   : > { %v615_v25 = vmul.f32 %v608_v41, %v598_v39 }
 0x2ac   : > { %v1469_v49 = vpop.permute.xlu0 %452  ;;  %831 = vmatprep.subr.mxu1 %v622_v47  ;;  %v538_v50 = vpop.permute.xlu1 %537 }
 0x2ad   : > { %832 = vmatpush1.msra.mxu1 %v621_v48  ;;  %v551_v4 = vsel %vm547_vm4, %v538_v50, %v546_v38  ;;  %v555_v47 = vsel %vm547_vm4, %v546_v38, %v538_v50  ;;  %v562_v48 = vrot.slane %v1062_v21, %v1453_v36 }
 0x2ae   : > { %v576_v26 = vmul.f32 %v566_v45, %v551_v4 }
 0x2b0   : > { %v1471_v51 = vpop.permute.xlu0 %729  ;;  %v492_v52 = vpop.permute.xlu1 %491 }
 0x2b1   : > { %v505_v24 = vsel %vm501_vm5, %v492_v52, %v1463_v43 }
 0x2b4   : > { %v1473_v53 = vpop.permute.xlu0 %683  ;;  %v1475_v54 = vpop.permute.xlu1 %444 }
 0x2b8   : > { %v544_v55 = vpop.permute.xlu0 %543  ;;  %v1477_v56 = vpop.permute.xlu1 %721 }
 0x2bc   : > { %v1479_v57 = vpop.permute.xlu0 %679  ;;  %v582_v60 = vpop.permute.xlu1 %581 }
 0x2c0   : > { %v1481_v63 = vpop.permute.xlu0 %497  ;;  %v590_v0 = vpop.permute.xlu1 %589 }
 0x2c1   : > { %v596_v10 = vsel %vm593_vm3, %v582_v60, %v590_v0  ;;  %v600_v11 = vsel %vm593_vm3, %v590_v0, %v582_v60 }
 0x2c2   : > { %v619_v17 = vmul.f32 %v608_v41, %v600_v11  ;;  %v620_v20 = vmul.f32 %v612_v42, %v596_v10  ;;  %v575_v10 = vmul.f32 %v562_v48, %v555_v47  ;;  %v553_v41 = vsel %vm547_vm4, %v1394_v8, %v1396_v9 }
 0x2c3   : > { %v552_v8 = vsel %vm547_vm4, %v1437_v27, %v1439_v28  ;;  %v571_v21 = vmul.f32 %v562_v48, %v553_v41 }
 0x2c4   : > { %v1503_v40 = vpop.permute.xlu0 %677  ;;  %833 = vmatprep.subr.mxu1 %v620_v20  ;;  %v1505_v44 = vpop.permute.xlu1 %675 }
 0x2c5   : > { %834 = vmatpush1.msra.mxu1 %v619_v17  ;;  %v548_v17 = vsel %vm547_vm4, %v1439_v28, %v1437_v27  ;;  %v516_v27 = vrot.slane %v1061_v16, %v1453_v36  ;;  %v569_v28 = vmul.f32 %v562_v48, %v552_v8 }
 0x2c6   : > { %835 = vmatprep.subr.mxu1 %v618_v33  ;;  %v520_v33 = vrot.slane %v1061_v16, %v1455_v37  ;;  %v570_v39 = vmul.f32 %v566_v45, %v548_v17 }
 0x2c7   : > { %836 = vmatpush1.msra.mxu1 %v617_v2  ;;  %v509_v2 = vsel %vm501_vm5, %v1463_v43, %v492_v52 }
 0x2c8   : > { %v1513_v60 = vpop.permute.xlu0 %450  ;;  %837 = vmatprep.subr.mxu1 %v616_v46  ;;  %v536_v0 = vpop.permute.xlu1 %535  ;;  %v530_v4 = vmul.f32 %v520_v33, %v505_v24 }
 0x2c9   : > { %v550_v42 = vsel %vm547_vm4, %v536_v0, %v544_v55  ;;  %v554_v38 = vsel %vm547_vm4, %v544_v55, %v536_v0  ;;  %838 = vmatpush1.msra.mxu1 %v615_v25  ;;  %v572_v55 = vmul.f32 %v566_v45, %v549_v7  ;;  %v503_v25 = vsel %vm501_vm5, %v1407_v14, %v1405_v13  ;;  %v465_v7 = vld [vmem:[%s1761_s1] ss:$8 sm:$0x3] }
 0x2ca   : > { %v573_v50 = vmul.f32 %v562_v48, %v554_v38  ;;  %v574_v11 = vmul.f32 %v566_v45, %v550_v42  ;;  %839 = vmatprep.subr.mxu1 %v576_v26  ;;  %v529_v45 = vmul.f32 %v516_v27, %v509_v2  ;;  %v507_v48 = vsel %vm501_vm5, %v1405_v13, %v1407_v14 }
 0x2cb   : > { %840 = vmatpush1.msra.mxu1 %v575_v10  ;;  %v502_v10 = vsel %vm501_vm5, %v1443_v30, %v1441_v29  ;;  %v506_v42 = vsel %vm501_vm5, %v1441_v29, %v1443_v30  ;;  %v525_v14 = vmul.f32 %v516_v27, %v507_v48  ;;  %v460_v38 = vsel %vm456_vm1, %v1475_v54, %v1469_v49  ;;  %v1065_v48 = vld [vmem:[%s1761_s1 + $0x6] ss:$8 sm:$0x3] }
 0x2cc   : > { %v1539_v9 = vpop.permute.xlu0 %637  ;;  %841 = vmatprep.subr.mxu1 %v574_v11  ;;  %v1541_v20 = vpop.permute.xlu1 %671  ;;  %v474_v41 = vrot.slane %v465_v7, %v1455_v37  ;;  %v464_v11 = vsel %vm456_vm1, %v1469_v49, %v1475_v54  ;;  %v470_v29 = vrot.slane %v465_v7, %v1453_v36  ;;  %v523_v30 = vmul.f32 %v516_v27, %v506_v42 }
 0x2cd   : > { %842 = vmatpush1.msra.mxu1 %v573_v50  ;;  %v524_v50 = vmul.f32 %v520_v33, %v502_v10  ;;  %v736_v10 = vsel %vm731_vm2, %v1449_v34, %v1451_v35  ;;  %v704_v42 = vrot.slane %v1065_v48, %v1455_v37 }
 0x2ce   : > { %843 = vmatprep.subr.mxu1 %v572_v55  ;;  %v484_v17 = vmul.f32 %v474_v41, %v460_v38  ;;  %v483_v8 = vmul.f32 %v470_v29, %v464_v11  ;;  %v480_v2 = vmul.f32 %v474_v41, %v1415_v18 }
 0x2cf   : > { %844 = vmatpush1.msra.mxu1 %v571_v21 }
 0x2d0   : > { %v1551_v46 = vpop.permute.xlu0 %727  ;;  %845 = vmatprep.subr.mxu1 %v570_v39  ;;  %v490_v47 = vpop.permute.xlu1 %489  ;;  %v457_v39 = vsel %vm456_vm1, %v1447_v32, %v1445_v31 }
 0x2d1   : > { %v504_v43 = vsel %vm501_vm5, %v490_v47, %v1481_v63  ;;  %v508_v52 = vsel %vm501_vm5, %v1481_v63, %v490_v47  ;;  %846 = vmatpush1.msra.mxu1 %v569_v28  ;;  %v526_v63 = vmul.f32 %v520_v33, %v503_v25  ;;  %v739_v47 = vsel %vm731_vm2, %v1471_v51, %v1477_v56 }
 0x2d2   : > { %v527_v26 = vmul.f32 %v516_v27, %v508_v52  ;;  %v528_v0 = vmul.f32 %v520_v33, %v504_v43  ;;  %847 = vmatprep.subr.mxu1 %v530_v4  ;;  %v1066_v33 = vld [vmem:[%s1761_s1 + $0x7] ss:$8 sm:$0x3]  ;;  %v479_v4 = vmul.f32 %v470_v29, %v1419_v19  ;;  %v478_v18 = vmul.f32 %v474_v41, %v457_v39 }
 0x2d3   : > { %848 = vmatpush1.msra.mxu1 %v529_v45  ;;  %v750_v25 = vrot.slane %v1066_v33, %v1455_v37 }
 0x2d4   : > { %849 = vmatprep.subr.mxu1 %v528_v0  ;;  %v1578_v13 = vpop.permute.xlu1 %669  ;;  %v1589_v16 = vpop.permute.xlu0 %633 }
 0x2d5   : > { %850 = vmatpush1.msra.mxu1 %v527_v26  ;;  %v760_v19 = vmul.f32 %v750_v25, %v739_v47 }
 0x2d6   : > { %851 = vmatprep.subr.mxu1 %v526_v63  ;;  %v756_v63 = vmul.f32 %v750_v25, %v1430_v23  ;;  %v754_v23 = vmul.f32 %v750_v25, %v736_v10 }
 0x2d7   : > { %852 = vmatpush1.msra.mxu1 %v525_v14 }
 0x2d8   : > { %853 = vmatprep.subr.mxu1 %v524_v50  ;;  %v443_v55 = vpop.permute.xlu1 %442  ;;  %v682_v27 = vpop.permute.xlu0 %681  ;;  %v693_v50 = vsel %vm685_vm6, %v1473_v53, %v1505_v44 }
 0x2d9   : > { %v459_v21 = vsel %vm456_vm1, %v443_v55, %v1513_v60  ;;  %v463_v24 = vsel %vm456_vm1, %v1513_v60, %v443_v55  ;;  %854 = vmatpush1.msra.mxu1 %v523_v30  ;;  %v461_v60 = vsel %vm456_vm1, %v1445_v31, %v1447_v32  ;;  %v735_v31 = vsel %vm731_vm2, %v1477_v56, %v1471_v51  ;;  %v1064_v55 = vld [vmem:[%s1761_s1 + $0x5] ss:$8 sm:$0x3] }
 0x2da   : > { %v481_v49 = vmul.f32 %v470_v29, %v463_v24  ;;  %v482_v54 = vmul.f32 %v474_v41, %v459_v21  ;;  %855 = vmatprep.subr.mxu1 %v484_v17  ;;  %v746_v32 = vrot.slane %v1066_v33, %v1453_v36  ;;  %v477_v45 = vmul.f32 %v470_v29, %v461_v60 }
 0x2db   : > { %856 = vmatpush1.msra.mxu1 %v483_v8  ;;  %v700_v41 = vrot.slane %v1065_v48, %v1453_v36  ;;  %v714_v11 = vmul.f32 %v704_v42, %v693_v50  ;;  %v691_v17 = vsel %vm685_vm6, %v1479_v57, %v1541_v20  ;;  %v687_v8 = vsel %vm685_vm6, %v1541_v20, %v1479_v57 }
 0x2dc   : > { %857 = vmatprep.subr.mxu1 %v482_v54  ;;  %v1610_v28 = vpop.permute.xlu1 %629  ;;  %v759_v52 = vmul.f32 %v746_v32, %v735_v31  ;;  %v1633_v56 = vpop.permute.xlu0 %631  ;;  %v755_v38 = vmul.f32 %v746_v32, %v1426_v22  ;;  %v710_v54 = vmul.f32 %v704_v42, %v691_v17  ;;  %v686_v33 = vsel %vm685_vm6, %v1578_v13, %v1503_v40 }
 0x2dd   : > { %858 = vmatpush1.msra.mxu1 %v481_v49  ;;  %v690_v49 = vsel %vm685_vm6, %v1503_v40, %v1578_v13  ;;  %v658_v39 = vrot.slane %v1064_v55, %v1455_v37  ;;  %v709_v20 = vmul.f32 %v700_v41, %v687_v8  ;;  %v647_v60 = vsel %vm639_vm7, %v1539_v9, %v1610_v28 }
 0x2de   : > { %859 = vmatprep.subr.mxu1 %v480_v2  ;;  %v654_v2 = vrot.slane %v1064_v55, %v1453_v36  ;;  %v643_v40 = vsel %vm639_vm7, %v1610_v28, %v1539_v9  ;;  %v707_v47 = vmul.f32 %v700_v41, %v686_v33 }
 0x2df   : > { %860 = vmatpush1.msra.mxu1 %v479_v4  ;;  %v708_v4 = vmul.f32 %v704_v42, %v690_v49 }
 0x2e0   : > { %861 = vmatprep.subr.mxu1 %v478_v18  ;;  %v720_v43 = vpop.permute.xlu1 %719  ;;  %v636_v29 = vpop.permute.xlu0 %635 }
 0x2e1   : > { %v734_v26 = vsel %vm731_vm2, %v720_v43, %v1551_v46  ;;  %v738_v51 = vsel %vm731_vm2, %v1551_v46, %v720_v43  ;;  %862 = vmatpush1.msra.mxu1 %v477_v45  ;;  %v732_v46 = vsel %vm731_vm2, %v1451_v35, %v1449_v34  ;;  %v689_v34 = vsel %vm685_vm6, %v1505_v44, %v1473_v53 }
 0x2e2   : > { %v757_v0 = vmul.f32 %v746_v32, %v734_v26  ;;  %v758_v7 = vmul.f32 %v750_v25, %v738_v51  ;;  %863 = vmatprep.subr.mxu1 %v760_v19  ;;  %v753_v35 = vmul.f32 %v746_v32, %v732_v46  ;;  %v713_v30 = vmul.f32 %v700_v41, %v689_v34 }
 0x2e3   : > { %864 = vmatpush2.msra.mxu1 %v759_v52  ;;  %v668_v25 = vmul.f32 %v658_v39, %v647_v60  ;;  %v667_v32 = vmul.f32 %v654_v2, %v643_v40 }
 0x2e4   : > { %865 = vmatprep.subr.mxu1 %v758_v7  ;;  %v626_v14 = vpop.permute.xlu1 %625  ;;  %v776_v13 = vpop.permute.xlu0 %775 }
 0x2e5   : > { %866 = vmatpush2.msra.mxu1 %v757_v0  ;;  %v645_v45 = vsel %vm639_vm7, %v1589_v16, %v626_v14  ;;  %v641_v28 = vsel %vm639_vm7, %v626_v14, %v1589_v16 }
 0x2e6   : > { %867 = vmatprep.subr.mxu1 %v756_v63  ;;  %v664_v26 = vmul.f32 %v658_v39, %v645_v45  ;;  %v663_v10 = vmul.f32 %v654_v2, %v641_v28 }
 0x2e7   : > { %868 = vmatpush2.msra.mxu1 %v755_v38 }
 0x2e8   : > { %869 = vmatprep.subr.mxu1 %v754_v23  ;;  %v674_v22 = vpop.permute.xlu1 %673  ;;  %v772_v51 = vpop.permute.xlu0 %771 }
 0x2e9   : > { %v688_v53 = vsel %vm685_vm6, %v674_v22, %v682_v27  ;;  %v692_v44 = vsel %vm685_vm6, %v682_v27, %v674_v22  ;;  %870 = vmatpush2.msra.mxu1 %v753_v35  ;;  %v1067_v27 = vld [vmem:[%s1761_s1 + $0x10] ss:$8 sm:$0x3] }
 0x2ea   : > { %v711_v21 = vmul.f32 %v700_v41, %v688_v53  ;;  %v712_v24 = vmul.f32 %v704_v42, %v692_v44  ;;  %871 = vmatprep.subr.mxu1 %v714_v11  ;;  %v792_v31 = vrot.slane %v1067_v27, %v1453_v36  ;;  %v796_v36 = vrot.slane %v1067_v27, %v1455_v37  ;;  %v809_v53 = vld [vmem:[%s1764_s4 + $0x10] sm:$0xff] }
 0x2eb   : > { %872 = vmatpush2.msra.mxu1 %v713_v30 }
 0x2ec   : > { %873 = vmatprep.subr.mxu1 %v712_v24  ;;  %v624_v57 = vpop.permute.xlu1 %623 }
 0x2ed   : > { %874 = vmatpush2.msra.mxu1 %v711_v21  ;;  %v644_v48 = vsel %vm639_vm7, %v1633_v56, %v624_v57  ;;  %v640_v0 = vsel %vm639_vm7, %v624_v57, %v1633_v56  ;;  %v774_v56 = vpop.permute.xlu0 %773 }
 0x2ee   : > { %875 = vmatprep.subr.mxu1 %v710_v54  ;;  %v662_v63 = vmul.f32 %v658_v39, %v644_v48  ;;  %v661_v14 = vmul.f32 %v654_v2, %v640_v0 }
 0x2ef   : > { %876 = vmatpush2.msra.mxu1 %v709_v20 }
 0x2f0   : > { %877 = vmatprep.subr.mxu1 %v708_v4  ;;  %v628_v18 = vpop.permute.xlu1 %627 }
 0x2f1   : > { %v642_v19 = vsel %vm639_vm7, %v628_v18, %v636_v29  ;;  %v646_v9 = vsel %vm639_vm7, %v636_v29, %v628_v18  ;;  %878 = vmatpush2.msra.mxu1 %v707_v47 }
 0x2f2   : > { %v665_v43 = vmul.f32 %v654_v2, %v642_v19  ;;  %v666_v52 = vmul.f32 %v658_v39, %v646_v9  ;;  %879 = vmatprep.subr.mxu1 %v668_v25 }
 0x2f3   : > { %880 = vmatpush2.msra.mxu1 %v667_v32 }
 0x2f4   : > { %881 = vmatprep.subr.mxu1 %v666_v52  ;;  %v768_v7 = vpop.permute.xlu1 %767 }
 0x2f5   : > { %v781_v16 = vsel %vm777_vm8, %v768_v7, %v776_v13  ;;  %v785_v37 = vsel %vm777_vm8, %v776_v13, %v768_v7  ;;  %882 = vmatpush2.msra.mxu1 %v665_v43 }
 0x2f6   : > { %v805_v46 = vmul.f32 %v792_v31, %v781_v16  ;;  %v806_v42 = vmul.f32 %v796_v36, %v785_v37  ;;  %883 = vmatprep.subr.mxu1 %v664_v26 }
 0x2f7   : > { %884 = vmatpush2.msra.mxu1 %v663_v10 }
 0x2f8   : > { %885 = vmatprep.subr.mxu1 %v662_v63  ;;  %932 = vmatprep.subr.mxu0 %v806_v42  ;;  %v764_v38 = vpop.permute.xlu1 %763 }
 0x2f9   : > { %886 = vmatpush2.msra.mxu1 %v661_v14  ;;  %933 = vmatpush1.msra.mxu0 %v805_v46  ;;  %v783_v50 = vsel %vm777_vm8, %v772_v51, %v764_v38  ;;  %v779_v35 = vsel %vm777_vm8, %v764_v38, %v772_v51 }
 0x2fa   : > { %887 = vmatprep.subr.mxu1 %v1307_v5  ;;  %v802_v29 = vmul.f32 %v796_v36, %v783_v50  ;;  %v801_v30 = vmul.f32 %v792_v31, %v779_v35 }
 0x2fb   : > { %888 = vmatpush2.msra.mxu1 %v1304_v3  ;;  %v807_v3 = vld [vmem:[%s1764_s4] sm:$0xff] }
 0x2fc   : > { %889 = vmatprep.subr.mxu1 %v1330_v1  ;;  %v766_v41 = vpop.permute.xlu1 %765  ;;  %v770_v1 = vpop.permute.xlu0 %769 }
 0x2fd   : > { %v780_v23 = vsel %vm777_vm8, %v766_v41, %v774_v56  ;;  %v784_v34 = vsel %vm777_vm8, %v774_v56, %v766_v41  ;;  %890 = vmatpush2.msra.mxu1 %v1337_v6  ;;  %v811_v6 = vld [vmem:[%s1764_s4 + $0x20] sm:$0xff] }
 0x2fe   : > { %v803_v5 = vmul.f32 %v792_v31, %v780_v23  ;;  %v804_v11 = vmul.f32 %v796_v36, %v784_v34  ;;  %891 = vmatprep.subr.mxu1 %v1255_v59 }
 0x2ff   : > { %892 = vmatpush2.msra.mxu1 %v1252_v58 }
 0x300   : > { %893 = vmatprep.subr.mxu1 %v1281_v62  ;;  %934 = vmatprep.subr.mxu0 %v804_v11  ;;  %v762_v22 = vpop.permute.xlu1 %761  ;;  %v810_v62 = vld [vmem:[%s1764_s4 + $0x18] sm:$0xff]  ;;  %v823_v54 = vpop.permute.xlu0 %822 }
 0x301   : > { %v778_v59 = vsel %vm777_vm8, %v762_v22, %v770_v1  ;;  %v782_v58 = vsel %vm777_vm8, %v770_v1, %v762_v22  ;;  %894 = vmatpush2.msra.mxu1 %v1278_v61  ;;  %935 = vmatpush1.msra.mxu0 %v803_v5  ;;  %v812_v61 = vld [vmem:[%s1764_s4 + $0x28] sm:$0xff] }
 0x302   : > { %v799_v17 = vmul.f32 %v792_v31, %v778_v59  ;;  %v800_v55 = vmul.f32 %v796_v36, %v782_v58  ;;  %896 = vmatmul.mubr.f32.vlgmr.msra.gmra.mxu1 %v807_v3  ;;  %936 = vmatprep.subr.mxu0 %v802_v29 }
 0x303   : > { %937 = vmatpush1.msra.mxu0 %v801_v30  ;;  %901 = vmatprep.mubr.f32.mxu1 %v811_v6 }
 0x304   : > { %938 = vmatprep.subr.mxu0 %v800_v55 }
 0x305   : > { %939 = vmatpush1.msra.mxu0 %v799_v17 }
 0x306   : > { %902 = vmatmul.mubr.f32.gmra.mxu1 %v810_v62  ;;  %1068 = vmatmul.mubr.msk.f32.vlgmr.msra.gmra.mxu0 %vm284_vm0, %v809_v53 }
 0x307   : > { %978 = vmatprep.mubr.f32.mxu0 %v1149_v15 }
 0x30a   : > { %1069 = vmatmul.mubr.msk.f32.gmra.mxu0 %vm284_vm0, %v812_v61 }
 0x30d   : > { %v818_v44 = vpop.permute.xlu1 %817 }
 0x3c2   : > { %v897_v12 = vpop.f32.mrf.mxu1 }
 0x3c3   : > { %v898_v21 = vadd.f32 %v897_v12, %v818_v44 }
 0x3c4   : > { %v899_v8 = vpop.f32.mrf.mxu1 }
 0x3c5   : > { %v900_v33 = vadd.f32 %v899_v8, %v818_v44 }
 0x3c6   : > { %v903_v24 = vpop.f32.mrf.mxu1  ;;  %v974_v49 = vpop.f32.mrf.mxu0 }
 0x3c7   : > { %v975_v15 = vadd.f32 %v974_v49, %v898_v21  ;;  %v904_v20 = vadd.f32 %v903_v24, %v823_v54 }
 0x3c8   : > { %v905_v39 = vpop.f32.mrf.mxu1  ;;  %v976_v57 = vpop.f32.mrf.mxu0 }
 0x3c9   : > { %985 = vst [vmem:[%s251_s18] sm:$0xff] %v975_v15  ;;  %v977_v2 = vadd.f32 %v976_v57, %v900_v33  ;;  %v906_v27 = vadd.f32 %v905_v39, %v823_v54 }
 0x3ca   : > { %v980_v60 = vpop.f32.mrf.mxu0 }
 0x3cb   : > { %986 = vst [vmem:[%s251_s18 + $0x8] sm:$0xff] %v977_v2  ;;  %v981_v4 = vadd.f32 %v980_v60, %v904_v20 }
 0x3cc   : > { %v982_v40 = vpop.f32.mrf.mxu0 }
 0x3cd   : > { %987 = vst [vmem:[%s251_s18 + $0x10] sm:$0xff] %v981_v4  ;;  %v983_v13 = vadd.f32 %v982_v40, %v906_v27 }
 0x3cf   : > { %988 = vst [vmem:[%s251_s18 + $0x18] sm:$0xff] %v983_v13 }
 0x3d0 PF: > { %s16_s21 = sadd.s32 1, %s1138_s21  }
 0x3d1   : > { %p13_p4 = scmp.ge.s32.totalorder %s16_s21, 4  }
 0x3d3   :  { %15 = sbr.rel (!%p13_p4) target bundleno = 1 (0x1), region = 81 }

</bundles_post_ra>
